<compile_context>
chip_gen: v6e
topology: v6e:2x2x1
jax: 0.10.0
libtpu: 0.0.40
codegen_flags: <defaults>
</compile_context>

<pallas_src>
import jax
import jax.numpy as jnp
from jax.experimental import pallas as pl
from jax.experimental.pallas import tpu as pltpu


def ddqn_mlp_kernel(x_ref, w1_ref, b1_ref, w2_ref, b2_ref, w3_ref, b3_ref, o_ref):
    """Fused forward: relu(relu(x@W1+b1)@W2+b2)@W3+b3 on one batch tile.

    x / W1 / W2 / W3 are bf16 (MXU fast path), accumulation + bias in f32.
    """
    x = x_ref[...]  # (TB, state_dim) bf16

    h1 = jnp.dot(x, w1_ref[...], preferred_element_type=jnp.float32) + b1_ref[...]
    h1 = jnp.maximum(h1, 0.0).astype(jnp.bfloat16)

    h2 = jnp.dot(h1, w2_ref[...], preferred_element_type=jnp.float32) + b2_ref[...]
    h2 = jnp.maximum(h2, 0.0).astype(jnp.bfloat16)

    out = jnp.dot(h2, w3_ref[...], preferred_element_type=jnp.float32) + b3_ref[...]
    o_ref[...] = out.astype(o_ref.dtype)  # lane-dense (TB, 128) store


def ddqn_forward(state, params, *, max_tile_batch=1024):
    """Flatten non-batch dims (torch.flatten(state, 1)) and run the fused MLP."""
    w1, b1, w2, b2, w3, b3 = params
    batch = state.shape[0]

    # --- glue in plain JAX: flatten, bf16 cast, padding ---------------------
    x = state.reshape(batch, -1).astype(jnp.bfloat16)
    state_dim = x.shape[1]
    n_hidden = w1.shape[1]
    action_dim = w3.shape[1]

    # Lane-dense output: pad action_dim up to a multiple of 128.
    padded_actions = max(128, 128 * pl.cdiv(action_dim, 128))
    w3p = jnp.zeros((n_hidden, padded_actions), w3.dtype).at[:, :action_dim].set(w3)
    b3p = jnp.zeros((1, padded_actions), b3.dtype).at[:, :action_dim].set(b3)

    # Batch tile: multiple of 256 (MXU M dim), capped for v7x's 64 MiB VMEM.
    tb = min(max_tile_batch, 256 * pl.cdiv(batch, 256))
    padded_batch = tb * pl.cdiv(batch, tb)
    if padded_batch != batch:
        x = jnp.pad(x, ((0, padded_batch - batch), (0, 0)))

    # bf16 weights for the MXU; biases stay f32.
    w1b = w1.astype(jnp.bfloat16)
    w2b = w2.astype(jnp.bfloat16)
    w3b = w3p.astype(jnp.bfloat16)

    grid = (padded_batch // tb,)

    out = pl.pallas_call(
        ddqn_mlp_kernel,
        out_shape=jax.ShapeDtypeStruct((padded_batch, padded_actions), jnp.float32),
        grid=grid,
        in_specs=[
            pl.BlockSpec((tb, state_dim), lambda i: (i, 0)),          # x (streamed)
            pl.BlockSpec((state_dim, n_hidden), lambda i: (0, 0)),    # W1 (resident)
            pl.BlockSpec((1, n_hidden), lambda i: (0, 0)),            # b1
            pl.BlockSpec((n_hidden, n_hidden), lambda i: (0, 0)),     # W2
            pl.BlockSpec((1, n_hidden), lambda i: (0, 0)),            # b2
            pl.BlockSpec((n_hidden, padded_actions), lambda i: (0, 0)),  # W3 (padded)
            pl.BlockSpec((1, padded_actions), lambda i: (0, 0)),      # b3 (padded)
        ],
        out_specs=pl.BlockSpec((tb, padded_actions), lambda i: (i, 0)),
        compiler_params=pltpu.CompilerParams(
            dimension_semantics=("parallel",),        # batch axis -> megacore shard
            vmem_limit_bytes=48 * 1024 * 1024,
        ),
    )(x, w1b, b1, w2b, b2, w3b, b3p)

    return out[:batch, :action_dim]


def init_params(key, state_dim, action_dim, n_hidden):
    """Deterministic synthetic parameters; weights stored [in, out] (= torch W.T)."""
    k1, k2, k3, k4, k5, k6 = jax.random.split(key, 6)
    s1 = 1.0 / jnp.sqrt(state_dim)
    s2 = 1.0 / jnp.sqrt(n_hidden)
    w1 = jax.random.uniform(k1, (state_dim, n_hidden), jnp.float32, -s1, s1)
    b1 = jax.random.uniform(k2, (1, n_hidden), jnp.float32, -s1, s1)
    w2 = jax.random.uniform(k3, (n_hidden, n_hidden), jnp.float32, -s2, s2)
    b2 = jax.random.uniform(k4, (1, n_hidden), jnp.float32, -s2, s2)
    w3 = jax.random.uniform(k5, (n_hidden, action_dim), jnp.float32, -s2, s2)
    b3 = jax.random.uniform(k6, (1, action_dim), jnp.float32, -s2, s2)
    return (w1, b1, w2, b2, w3, b3)


if __name__ == "__main__":
    key = jax.random.PRNGKey(0)
    k_state, k_params = jax.random.split(key)

    # Small shapes: batch=2, raw state (4, 8) -> flattened state_dim=32
    batch, c, s = 2, 4, 8
    state_dim = c * s
    n_hidden = 128
    action_dim = 8

    state = jax.random.normal(k_state, (batch, c, s), dtype=jnp.float32)
    params = init_params(k_params, state_dim, action_dim, n_hidden)

    out = ddqn_forward(state, params)
    out = jax.block_until_ready(out)
    assert out.shape == (batch, action_dim)

    # Reference with the same bf16-operand / f32-accumulate math as the kernel.
    w1, b1, w2, b2, w3, b3 = params
    xb = state.reshape(batch, -1).astype(jnp.bfloat16)
    ref = jnp.maximum(
        jnp.dot(xb, w1.astype(jnp.bfloat16), preferred_element_type=jnp.float32) + b1, 0.0
    ).astype(jnp.bfloat16)
    ref = jnp.maximum(
        jnp.dot(ref, w2.astype(jnp.bfloat16), preferred_element_type=jnp.float32) + b2, 0.0
    ).astype(jnp.bfloat16)
    ref = jnp.dot(ref, w3.astype(jnp.bfloat16), preferred_element_type=jnp.float32) + b3
    assert jnp.allclose(out, ref, atol=1e-2, rtol=1e-2)

    # Sanity vs full-f32 math (loose: bf16 operand rounding).
    rf = jnp.maximum(state.reshape(batch, -1) @ w1 + b1, 0.0)
    rf = jnp.maximum(rf @ w2 + b2, 0.0)
    rf = rf @ w3 + b3
    assert jnp.allclose(out, rf, atol=5e-2, rtol=5e-2)

    print("KERNEL_OK")
</pallas_src>

<mosaic_0001>
module attributes {stable_mosaic.version = 11 : i64} {
  func.func @ddqn_mlp_kernel(%arg0: i32, %arg1: memref<256x32xbf16, #tpu.memory_space<vmem>>, %arg2: memref<32x128xbf16, #tpu.memory_space<vmem>>, %arg3: memref<1x128xf32, #tpu.memory_space<vmem>>, %arg4: memref<128x128xbf16, #tpu.memory_space<vmem>>, %arg5: memref<1x128xf32, #tpu.memory_space<vmem>>, %arg6: memref<128x128xbf16, #tpu.memory_space<vmem>>, %arg7: memref<1x128xf32, #tpu.memory_space<vmem>>, %arg8: memref<256x128xf32, #tpu.memory_space<vmem>>) attributes {dimension_semantics = [#tpu.dimension_semantics<parallel>], iteration_bounds = array<i64: 1>, scalar_prefetch = 0 : i64, scratch_operands = 0 : i64, tpu.core_type = #tpu.core_type<tc>, window_params = [{transform_indices = @transform_0, window_bounds = array<i64: 256, 32>}, {pipeline_mode = #tpu.pipeline_mode<synchronous>, transform_indices = @transform_1, window_bounds = array<i64: 32, 128>}, {pipeline_mode = #tpu.pipeline_mode<synchronous>, transform_indices = @transform_2, window_bounds = array<i64: 1, 128>}, {pipeline_mode = #tpu.pipeline_mode<synchronous>, transform_indices = @transform_3, window_bounds = array<i64: 128, 128>}, {pipeline_mode = #tpu.pipeline_mode<synchronous>, transform_indices = @transform_4, window_bounds = array<i64: 1, 128>}, {pipeline_mode = #tpu.pipeline_mode<synchronous>, transform_indices = @transform_5, window_bounds = array<i64: 128, 128>}, {pipeline_mode = #tpu.pipeline_mode<synchronous>, transform_indices = @transform_6, window_bounds = array<i64: 1, 128>}, {transform_indices = @transform_7, window_bounds = array<i64: 256, 128>}]} {
    %c0 = arith.constant 0 : index
    %c0_0 = arith.constant 0 : index
    %0 = vector.load %arg1[%c0, %c0_0] : memref<256x32xbf16, #tpu.memory_space<vmem>>, vector<256x32xbf16>
    %c0_1 = arith.constant 0 : index
    %c0_2 = arith.constant 0 : index
    %1 = vector.load %arg2[%c0_1, %c0_2] : memref<32x128xbf16, #tpu.memory_space<vmem>>, vector<32x128xbf16>
    %cst = arith.constant dense<0.000000e+00> : vector<256x128xf32>
    %2 = tpu.matmul %0, %1, %cst {dimension_numbers = #tpu.dot_dimension_numbers<[1], [0], [0], [1], [0, 0, 1, 1], [], []>} : vector<256x32xbf16>, vector<32x128xbf16>, vector<256x128xf32> -> vector<256x128xf32>
    %c0_3 = arith.constant 0 : index
    %c0_4 = arith.constant 0 : index
    %3 = vector.load %arg3[%c0_3, %c0_4] : memref<1x128xf32, #tpu.memory_space<vmem>>, vector<1x128xf32>
    %4 = vector.broadcast %3 : vector<1x128xf32> to vector<256x128xf32>
    %5 = arith.addf %2, %4 : vector<256x128xf32>
    %cst_5 = arith.constant 0.000000e+00 : f32
    %6 = vector.broadcast %cst_5 : f32 to vector<256x128xf32>
    %7 = arith.maximumf %5, %6 : vector<256x128xf32>
    %8 = arith.truncf %7 : vector<256x128xf32> to vector<256x128xbf16>
    %c0_6 = arith.constant 0 : index
    %c0_7 = arith.constant 0 : index
    %9 = vector.load %arg4[%c0_6, %c0_7] : memref<128x128xbf16, #tpu.memory_space<vmem>>, vector<128x128xbf16>
    %cst_8 = arith.constant dense<0.000000e+00> : vector<256x128xf32>
    %10 = tpu.matmul %8, %9, %cst_8 {dimension_numbers = #tpu.dot_dimension_numbers<[1], [0], [0], [1], [0, 0, 1, 1], [], []>} : vector<256x128xbf16>, vector<128x128xbf16>, vector<256x128xf32> -> vector<256x128xf32>
    %c0_9 = arith.constant 0 : index
    %c0_10 = arith.constant 0 : index
    %11 = vector.load %arg5[%c0_9, %c0_10] : memref<1x128xf32, #tpu.memory_space<vmem>>, vector<1x128xf32>
    %12 = vector.broadcast %11 : vector<1x128xf32> to vector<256x128xf32>
    %13 = arith.addf %10, %12 : vector<256x128xf32>
    %cst_11 = arith.constant 0.000000e+00 : f32
    %14 = vector.broadcast %cst_11 : f32 to vector<256x128xf32>
    %15 = arith.maximumf %13, %14 : vector<256x128xf32>
    %16 = arith.truncf %15 : vector<256x128xf32> to vector<256x128xbf16>
    %c0_12 = arith.constant 0 : index
    %c0_13 = arith.constant 0 : index
    %17 = vector.load %arg6[%c0_12, %c0_13] : memref<128x128xbf16, #tpu.memory_space<vmem>>, vector<128x128xbf16>
    %cst_14 = arith.constant dense<0.000000e+00> : vector<256x128xf32>
    %18 = tpu.matmul %16, %17, %cst_14 {dimension_numbers = #tpu.dot_dimension_numbers<[1], [0], [0], [1], [0, 0, 1, 1], [], []>} : vector<256x128xbf16>, vector<128x128xbf16>, vector<256x128xf32> -> vector<256x128xf32>
    %c0_15 = arith.constant 0 : index
    %c0_16 = arith.constant 0 : index
    %19 = vector.load %arg7[%c0_15, %c0_16] : memref<1x128xf32, #tpu.memory_space<vmem>>, vector<1x128xf32>
    %20 = vector.broadcast %19 : vector<1x128xf32> to vector<256x128xf32>
    %21 = arith.addf %18, %20 : vector<256x128xf32>
    %c0_17 = arith.constant 0 : index
    %c0_18 = arith.constant 0 : index
    %22 = vector.load %arg8[%c0_17, %c0_18] : memref<256x128xf32, #tpu.memory_space<vmem>>, vector<256x128xf32>
    tpu.vector_store %arg8[%c0_17, %c0_18], %21 {strides = array<i32>} : memref<256x128xf32, #tpu.memory_space<vmem>>, vector<256x128xf32>,
    return
  }
  func.func @transform_0(%arg0: i32) -> (i32, i32) {
    %c0_i32 = arith.constant 0 : i32
    %c0_i32_0 = arith.constant 0 : i32
    return %arg0, %c0_i32 : i32, i32
  }
  func.func @transform_1(%arg0: i32) -> (i32, i32) {
    %c0_i32 = arith.constant 0 : i32
    %c0_i32_0 = arith.constant 0 : i32
    %c0_i32_1 = arith.constant 0 : i32
    return %c0_i32, %c0_i32_0 : i32, i32
  }
  func.func @transform_2(%arg0: i32) -> (i32, i32) {
    %c0_i32 = arith.constant 0 : i32
    %c0_i32_0 = arith.constant 0 : i32
    %c0_i32_1 = arith.constant 0 : i32
    return %c0_i32, %c0_i32_0 : i32, i32
  }
  func.func @transform_3(%arg0: i32) -> (i32, i32) {
    %c0_i32 = arith.constant 0 : i32
    %c0_i32_0 = arith.constant 0 : i32
    %c0_i32_1 = arith.constant 0 : i32
    return %c0_i32, %c0_i32_0 : i32, i32
  }
  func.func @transform_4(%arg0: i32) -> (i32, i32) {
    %c0_i32 = arith.constant 0 : i32
    %c0_i32_0 = arith.constant 0 : i32
    %c0_i32_1 = arith.constant 0 : i32
    return %c0_i32, %c0_i32_0 : i32, i32
  }
  func.func @transform_5(%arg0: i32) -> (i32, i32) {
    %c0_i32 = arith.constant 0 : i32
    %c0_i32_0 = arith.constant 0 : i32
    %c0_i32_1 = arith.constant 0 : i32
    return %c0_i32, %c0_i32_0 : i32, i32
  }
  func.func @transform_6(%arg0: i32) -> (i32, i32) {
    %c0_i32 = arith.constant 0 : i32
    %c0_i32_0 = arith.constant 0 : i32
    %c0_i32_1 = arith.constant 0 : i32
    return %c0_i32, %c0_i32_0 : i32, i32
  }
  func.func @transform_7(%arg0: i32) -> (i32, i32) {
    %c0_i32 = arith.constant 0 : i32
    %c0_i32_0 = arith.constant 0 : i32
    return %arg0, %c0_i32 : i32, i32
  }
}

</mosaic_0001>

<bundles_post_ra>
// kernel: tpu_custom_call.1
= control target key start
LH: loop header
LB: loop body
LE: loop exit
PB: predicated region body
PF: predicated region fallthrough
CT: control target
= control target key end

     0   :  { %vm163_vm0 = vcmask 261120   ;;  %s1585_s0 = inlined_call_operand.vmem [shape: bf16[256,32], index: 0, kind: input, shape index: {}]   ;;  %s1586_s1 = inlined_call_operand.vmem [shape: bf16[32,128], index: 1, kind: input, shape index: {}]   ;;  %s1587_s2 = inlined_call_operand.vmem [shape: f32[1,128], index: 2, kind: input, shape index: {}]   ;;  %s1588_s3 = inlined_call_operand.vmem [shape: bf16[128,128], index: 3, kind: input, shape index: {}]   ;;  %s1589_s4 = inlined_call_operand.vmem [shape: f32[1,128], index: 4, kind: input, shape index: {}]   ;;  %s1590_s5 = inlined_call_operand.vmem [shape: bf16[128,128], index: 5, kind: input, shape index: {}]   ;;  %s1591_s6 = inlined_call_operand.vmem [shape: f32[1,128], index: 6, kind: input, shape index: {}]   ;;  %s1592_s7 = inlined_call_operand.hbm [shape: f32[256,128], index: 7, kind: output, shape index: {}]  }
   0x1   :  { %v1239_v0 = vld [vmem:[%s1586_s1 + $0x8] sm:$0xff]   ;;  %v1240_v1 = vld [vmem:[%s1586_s1] sm:$0xff]   ;;  %v1243_v4 = vld [vmem:[%s1585_s0 + $0x10] sm:$0xff]  }
   0x2   :  { %1100 = vmatprep.subr.bf16.mxu0 %v1239_v0  ;;  %v1241_v2 = vld [vmem:[%s1585_s0] sm:$0xff]   ;;  %1232 = vmatprep.subr.bf16.mxu1 %v1239_v0  ;;  %v1242_v3 = vld [vmem:[%s1585_s0 + $0x8] sm:$0xff]   ;;  %v1251_v7 = vld [vmem:[%s1585_s0 + $0x50] sm:$0xff]  }
   0x3   :  { %1101 = vmatpush3.bf16.msra.mxu0 %v1239_v0  ;;  %1234 = vmatpush3.bf16.msra.mxu1 %v1239_v0  ;;  %v1249_v5 = vld [vmem:[%s1585_s0 + $0x40] sm:$0xff]   ;;  %v1250_v6 = vld [vmem:[%s1585_s0 + $0x48] sm:$0xff]   ;;  %v1244_v8 = vld [vmem:[%s1585_s0 + $0x18] sm:$0xff]  }
   0x4   :  { %1102 = vmatprep.subr.bf16.mxu0 %v1240_v1  ;;  %1104 = vmatprep.mubr.msk.bf16.mxu0 %vm163_vm0, %v1241_v2  ;;  %v1245_v9 = vld [vmem:[%s1585_s0 + $0x20] sm:$0xff]   ;;  %v1252_v10 = vld [vmem:[%s1585_s0 + $0x58] sm:$0xff]   ;;  %v1258_v13 = vld [vmem:[%s1588_s3 + $0x30] sm:$0xff]  }
   0x5   :  { %1233 = vmatprep.subr.bf16.mxu1 %v1240_v1  ;;  %1120 = vmatprep.mubr.msk.bf16.mxu1 %vm163_vm0, %v1249_v5  ;;  %v1253_v11 = vld [vmem:[%s1585_s0 + $0x60] sm:$0xff]   ;;  %v1257_v12 = vld [vmem:[%s1588_s3 + $0x38] sm:$0xff]   ;;  %v1246_v14 = vld [vmem:[%s1585_s0 + $0x28] sm:$0xff]  }
   0x6   :  { %v1247_v15 = vld [vmem:[%s1585_s0 + $0x30] sm:$0xff]   ;;  %v1259_v16 = vld [vmem:[%s1588_s3 + $0x28] sm:$0xff]   ;;  %v1260_v19 = vld [vmem:[%s1588_s3 + $0x20] sm:$0xff]  }
   0x7   :  { %1103 = vmatpush3.bf16.msra.mxu0 %v1240_v1  ;;  %1235 = vmatpush3.bf16.msra.mxu1 %v1240_v1  ;;  %v1254_v17 = vld [vmem:[%s1585_s0 + $0x68] sm:$0xff]   ;;  %v1255_v18 = vld [vmem:[%s1585_s0 + $0x70] sm:$0xff]   ;;  %v1248_v20 = vld [vmem:[%s1585_s0 + $0x38] sm:$0xff]  }
   0x8   :  { %1136 = vmatprep.subr.bf16.mxu1 %v1257_v12 }
   0xa   :  { %1105 = vmatmul.mubr.msk.bf16.vlgmr.msra.gmra.mxu0 %vm163_vm0, %v1242_v3  ;;  %1121 = vmatmul.mubr.msk.bf16.vlgmr.msra.gmra.mxu1 %vm163_vm0, %v1250_v6 }
   0xb   :  { %1108 = vmatprep.mubr.msk.bf16.mxu0 %vm163_vm0, %v1243_v4  ;;  %1124 = vmatprep.mubr.msk.bf16.mxu1 %vm163_vm0, %v1251_v7 }
   0xc   :  { %1137 = vmatpush3.bf16.msra.mxu1 %v1257_v12 }
   0xd   :  { %1138 = vmatprep.subr.bf16.mxu1 %v1258_v13 }
  0x10   :  { %1139 = vmatpush3.bf16.msra.mxu1 %v1258_v13 }
  0x11   :  { %1140 = vmatprep.subr.bf16.mxu1 %v1259_v16 }
  0x12   :  { %1109 = vmatmul.mubr.msk.bf16.gmra.mxu0 %vm163_vm0, %v1244_v8  ;;  %1125 = vmatmul.mubr.msk.bf16.gmra.mxu1 %vm163_vm0, %v1252_v10 }
  0x13   :  { %1112 = vmatprep.mubr.msk.bf16.mxu0 %vm163_vm0, %v1245_v9  ;;  %1128 = vmatprep.mubr.msk.bf16.mxu1 %vm163_vm0, %v1253_v11 }
  0x14   :  { %1141 = vmatpush3.bf16.msra.mxu1 %v1259_v16 }
  0x1a   :  { %1113 = vmatmul.mubr.msk.bf16.gmra.mxu0 %vm163_vm0, %v1246_v14  ;;  %1129 = vmatmul.mubr.msk.bf16.gmra.mxu1 %vm163_vm0, %v1254_v17 }
  0x1b   :  { %1116 = vmatprep.mubr.msk.bf16.mxu0 %vm163_vm0, %v1247_v15  ;;  %1132 = vmatprep.mubr.msk.bf16.mxu1 %vm163_vm0, %v1255_v18 }
  0x1c   :  { %12 = vsyncpa [#allocation3], 0  ;;  %1142 = vmatprep.subr.bf16.mxu1 %v1260_v19  ;;  %v1261_v21 = vld [vmem:[%s1588_s3 + $0x18] sm:$0xff]   ;;  %v1262_v23 = vld [vmem:[%s1588_s3 + $0x10] sm:$0xff]  }
  0x1d   :  { %v1256_v22 = vld [vmem:[%s1585_s0 + $0x78] sm:$0xff]   ;;  %1143 = vmatpush3.bf16.msra.mxu1 %v1260_v19  ;;  %v1263_v24 = vld [vmem:[%s1588_s3 + $0x8] sm:$0xff]   ;;  %v1264_v25 = vld [vmem:[%s1588_s3] sm:$0xff]  }
  0x1e   :  { %1144 = vmatprep.subr.bf16.mxu1 %v1261_v21  ;;  %v1265_v26 = vld [vmem:[%s1590_s5 + $0x38] sm:$0xff]   ;;  %v1266_v27 = vld [vmem:[%s1590_s5 + $0x30] sm:$0xff]   ;;  %v1267_v28 = vld [vmem:[%s1590_s5 + $0x28] sm:$0xff]  }
  0x1f   :  { %1184 = vmatprep.subr.bf16.mxu0 %v1265_v26  ;;  %v1268_v29 = vld [vmem:[%s1590_s5 + $0x20] sm:$0xff]   ;;  %v1269_v30 = vld [vmem:[%s1590_s5 + $0x18] sm:$0xff]  }
  0x20   :  { %1185 = vmatpush3.bf16.msra.mxu0 %v1265_v26  ;;  %v1450_v33 = vld [vmem:[%s1587_s2] ss:$0 sm:$0xff] }
  0x21   :  { %1145 = vmatpush3.bf16.msra.mxu1 %v1261_v21  ;;  %1186 = vmatprep.subr.bf16.mxu0 %v1266_v27 }
  0x22   :  { %1117 = vmatmul.mubr.msk.bf16.gmra.mxu0 %vm163_vm0, %v1248_v20  ;;  %1133 = vmatmul.mubr.msk.bf16.gmra.mxu1 %vm163_vm0, %v1256_v22 }
  0x23   :  { %1146 = vmatprep.subr.bf16.mxu1 %v1262_v23 }
  0x24   :  { %1187 = vmatpush3.bf16.msra.mxu0 %v1266_v27 }
  0x25   :  { %1147 = vmatpush3.bf16.msra.mxu1 %v1262_v23  ;;  %1188 = vmatprep.subr.bf16.mxu0 %v1267_v28 }
  0x26   :  { %1148 = vmatprep.subr.bf16.mxu1 %v1263_v24 }
  0x28   :  { %1189 = vmatpush3.bf16.msra.mxu0 %v1267_v28 }
  0x29   :  { %1149 = vmatpush3.bf16.msra.mxu1 %v1263_v24  ;;  %1190 = vmatprep.subr.bf16.mxu0 %v1268_v29 }
  0x2a   :  { %1150 = vmatprep.subr.bf16.mxu1 %v1264_v25 }
  0x2c   :  { %1191 = vmatpush3.bf16.msra.mxu0 %v1268_v29 }
  0x2d   :  { %1151 = vmatpush3.bf16.msra.mxu1 %v1264_v25  ;;  %1192 = vmatprep.subr.bf16.mxu0 %v1269_v30 }
  0x30   :  { %1193 = vmatpush3.bf16.msra.mxu0 %v1269_v30 }
  0xca   :  { %v1106_v31 = vpop.f32.mrf.mxu0  ;;  %v1452_v34 = vpop.f32.mrf.mxu1 }
  0xcb   :  { %v255_v39 = vadd.f32 %v1106_v31, %v1450_v33 }
  0xcc   :  { %v246_v32 = vpop.f32.mrf.mxu0  ;;  %v310_v38 = vpop.f32.mrf.mxu1 }
  0xcd   :  { %v247_v36 = vadd.f32 %v1450_v33, %v246_v32  ;;  %v375_v48 = vmax.f32 %v255_v39, 0.0  ;;  %v311_v21 = vadd.f32 %v1450_v33, %v310_v38 }
  0xce   :  { %v1107_v35 = vpop.f32.mrf.mxu0  ;;  %v1458_v42 = vpop.f32.mrf.mxu1 }
  0xcf   :  { %v258_v37 = vadd.f32 %v1107_v35, %v1450_v33  ;;  %v373_v45 = vmax.f32 %v247_v36, 0.0  ;;  %v389_v30 = vmax.f32 %v311_v21, 0.0  ;;  %v1511_v21 = vld [vmem:[%s1589_s4] ss:$0 sm:$0xff] }
  0xd0   :  { %v249_v40 = vpop.f32.mrf.mxu0  ;;  %v313_v47 = vpop.f32.mrf.mxu1 }
  0xd1   :  { %v250_v41 = vadd.f32 %v1450_v33, %v249_v40  ;;  %v376_v43 = vmax.f32 %v258_v37, 0.0  ;;  %v314_v22 = vadd.f32 %v1450_v33, %v313_v47  ;;  %v322_v47 = vadd.f32 %v1458_v42, %v1450_v33 }
  0xd2   :  { %v1110_v44 = vpop.f32.mrf.mxu0  ;;  %v1460_v51 = vpop.f32.mrf.mxu1 }
  0xd3   :  { %v374_v46 = vmax.f32 %v250_v41, 0.0  ;;  %v406_v52 = vpack.c.bf16 %v376_v43, %v375_v48  ;;  %v271_v57 = vadd.f32 %v1110_v44, %v1450_v33  ;;  %v390_v32 = vmax.f32 %v314_v22, 0.0 }
  0xd4   :  { %v262_v49 = vpop.f32.mrf.mxu0  ;;  %v326_v56 = vpop.f32.mrf.mxu1 }
  0xd5   :  { %v405_v50 = vpack.c.bf16 %v374_v46, %v373_v45  ;;  %v263_v54 = vadd.f32 %v1450_v33, %v262_v49  ;;  %v379_v2 = vmax.f32 %v271_v57, 0.0  ;;  %v413_v41 = vpack.c.bf16 %v390_v32, %v389_v30 }
  0xd6   :  { %v1111_v53 = vpop.f32.mrf.mxu0  ;;  %v1466_v60 = vpop.f32.mrf.mxu1  ;;  %v327_v43 = vadd.f32 %v1450_v33, %v326_v56  ;;  %v319_v45 = vadd.f32 %v1452_v34, %v1450_v33  ;;  %v335_v34 = vadd.f32 %v1460_v51, %v1450_v33 }
  0xd7   :  { %v274_v55 = vadd.f32 %v1111_v53, %v1450_v33  ;;  %1152 = vmatprep.mubr.bf16.mxu1 %v405_v50  ;;  %v377_v63 = vmax.f32 %v263_v54, 0.0  ;;  %v392_v53 = vmax.f32 %v322_v47, 0.0  ;;  %v338_v42 = vadd.f32 %v1466_v60, %v1450_v33 }
  0xd8   :  { %v265_v58 = vpop.f32.mrf.mxu0  ;;  %1153 = vmatmul.mubr.bf16.vlgmr.msra.gmra.mxu1 %v406_v52  ;;  %v329_v1 = vpop.f32.mrf.mxu1  ;;  %v393_v49 = vmax.f32 %v327_v43, 0.0  ;;  %v391_v52 = vmax.f32 %v319_v45, 0.0 }
  0xd9   :  { %v266_v59 = vadd.f32 %v1450_v33, %v265_v58  ;;  %v380_v61 = vmax.f32 %v274_v55, 0.0  ;;  %v330_v44 = vadd.f32 %v1450_v33, %v329_v1 }
  0xda   :  { %v1114_v62 = vpop.f32.mrf.mxu0  ;;  %v1468_v7 = vpop.f32.mrf.mxu1  ;;  %v414_v58 = vpack.c.bf16 %v392_v53, %v391_v52 }
  0xdb   :  { %v378_v0 = vmax.f32 %v266_v59, 0.0  ;;  %v408_v5 = vpack.c.bf16 %v380_v61, %v379_v2  ;;  %v287_v10 = vadd.f32 %v1114_v62, %v1450_v33  ;;  %v394_v50 = vmax.f32 %v330_v44, 0.0 }
  0xdc   :  { %v278_v3 = vpop.f32.mrf.mxu0  ;;  %v342_v15 = vpop.f32.mrf.mxu1  ;;  %v351_v51 = vadd.f32 %v1468_v7, %v1450_v33  ;;  %v1270_v7 = vld [vmem:[%s1590_s5 + $0x10] sm:$0xff]  }
  0xdd   :  { %v407_v4 = vpack.c.bf16 %v378_v0, %v377_v63  ;;  %v279_v8 = vadd.f32 %v1450_v33, %v278_v3  ;;  %v383_v18 = vmax.f32 %v287_v10, 0.0  ;;  %v415_v55 = vpack.c.bf16 %v394_v50, %v393_v49  ;;  %1194 = vmatprep.subr.bf16.mxu0 %v1270_v7 }
  0xde   :  { %v1115_v6 = vpop.f32.mrf.mxu0  ;;  %v1131_v25 = vpop.f32.mrf.mxu1  ;;  %v343_v56 = vadd.f32 %v1450_v33, %v342_v15  ;;  %v395_v63 = vmax.f32 %v335_v34, 0.0  ;;  %v396_v0 = vmax.f32 %v338_v42, 0.0  ;;  %1195 = vmatpush3.bf16.msra.mxu0 %v1270_v7 }
  0xdf   :  { %v290_v9 = vadd.f32 %v1115_v6, %v1450_v33  ;;  %1156 = vmatprep.mubr.bf16.mxu1 %v407_v4  ;;  %v381_v16 = vmax.f32 %v279_v8, 0.0  ;;  %v354_v6 = vadd.f32 %v1131_v25, %v1450_v33 }
  0xe0   :  { %v281_v11 = vpop.f32.mrf.mxu0  ;;  %1157 = vmatmul.mubr.bf16.gmra.mxu1 %v408_v5  ;;  %v345_v36 = vpop.f32.mrf.mxu1  ;;  %v397_v61 = vmax.f32 %v343_v56, 0.0  ;;  %v416_v5 = vpack.c.bf16 %v396_v0, %v395_v63 }
  0xe1   :  { %v282_v12 = vadd.f32 %v1450_v33, %v281_v11  ;;  %v384_v13 = vmax.f32 %v290_v9, 0.0  ;;  %v346_v57 = vadd.f32 %v1450_v33, %v345_v36  ;;  %v399_v9 = vmax.f32 %v351_v51, 0.0 }
  0xe2   :  { %v1118_v14 = vpop.f32.mrf.mxu0  ;;  %v1134_v48 = vpop.f32.mrf.mxu1  ;;  %v400_v10 = vmax.f32 %v354_v6, 0.0 }
  0xe3   :  { %v382_v17 = vmax.f32 %v282_v12, 0.0  ;;  %v410_v23 = vpack.c.bf16 %v384_v13, %v383_v18  ;;  %v303_v28 = vadd.f32 %v1118_v14, %v1450_v33  ;;  %v398_v62 = vmax.f32 %v346_v57, 0.0  ;;  %v1271_v18 = vld [vmem:[%s1590_s5 + $0x8] sm:$0xff]  }
  0xe4   :  { %v294_v19 = vpop.f32.mrf.mxu0  ;;  %v358_v54 = vpop.f32.mrf.mxu1  ;;  %v418_v12 = vpack.c.bf16 %v400_v10, %v399_v9  ;;  %v367_v13 = vadd.f32 %v1134_v48, %v1450_v33  ;;  %1196 = vmatprep.subr.bf16.mxu0 %v1271_v18 }
  0xe5   :  { %v409_v20 = vpack.c.bf16 %v382_v17, %v381_v16  ;;  %v295_v26 = vadd.f32 %v1450_v33, %v294_v19  ;;  %v387_v39 = vmax.f32 %v303_v28, 0.0  ;;  %v417_v2 = vpack.c.bf16 %v398_v62, %v397_v61  ;;  %1197 = vmatpush3.bf16.msra.mxu0 %v1271_v18 }
  0xe6   :  { %v1119_v24 = vpop.f32.mrf.mxu0  ;;  %v1135_v59 = vpop.f32.mrf.mxu1  ;;  %v359_v3 = vadd.f32 %v1450_v33, %v358_v54  ;;  %v403_v15 = vmax.f32 %v367_v13, 0.0 }
  0xe7   :  { %v306_v27 = vadd.f32 %v1119_v24, %v1450_v33  ;;  %1160 = vmatprep.mubr.bf16.mxu1 %v409_v20  ;;  %v385_v37 = vmax.f32 %v295_v26, 0.0  ;;  %v370_v14 = vadd.f32 %v1135_v59, %v1450_v33 }
  0xe8   :  { %v297_v29 = vpop.f32.mrf.mxu0  ;;  %1161 = vmatmul.mubr.bf16.gmra.mxu1 %v410_v23  ;;  %v361_v1 = vpop.f32.mrf.mxu1  ;;  %v401_v60 = vmax.f32 %v359_v3, 0.0 }
  0xe9   :  { %v298_v31 = vadd.f32 %v1450_v33, %v297_v29  ;;  %v388_v35 = vmax.f32 %v306_v27, 0.0  ;;  %v362_v4 = vadd.f32 %v1450_v33, %v361_v1  ;;  %v404_v16 = vmax.f32 %v370_v14, 0.0  ;;  %v1272_v33 = vld [vmem:[%s1590_s5] sm:$0xff]  }
  0xea   :  { %1198 = vmatprep.subr.bf16.mxu0 %v1272_v33 }
  0xeb   :  { %v386_v38 = vmax.f32 %v298_v31, 0.0  ;;  %v412_v46 = vpack.c.bf16 %v388_v35, %v387_v39  ;;  %v402_v8 = vmax.f32 %v362_v4, 0.0  ;;  %v420_v17 = vpack.c.bf16 %v404_v16, %v403_v15  ;;  %1199 = vmatpush3.bf16.msra.mxu0 %v1272_v33 }
  0xed   :  { %v411_v40 = vpack.c.bf16 %v386_v38, %v385_v37  ;;  %v419_v11 = vpack.c.bf16 %v402_v8, %v401_v60 }
  0xef   :  { %1164 = vmatprep.mubr.bf16.mxu1 %v411_v40 }
  0xf0   :  { %1165 = vmatmul.mubr.bf16.gmra.mxu1 %v412_v46 }
  0xf1   :  { %1168 = vmatprep.mubr.bf16.mxu1 %v413_v41 }
  0xf8   :  { %1169 = vmatmul.mubr.bf16.gmra.mxu1 %v414_v58 }
  0xf9   :  { %1172 = vmatprep.mubr.bf16.mxu1 %v415_v55 }
 0x100   :  { %1173 = vmatmul.mubr.bf16.gmra.mxu1 %v416_v5 }
 0x101   :  { %1176 = vmatprep.mubr.bf16.mxu1 %v417_v2 }
 0x108   :  { %1177 = vmatmul.mubr.bf16.gmra.mxu1 %v418_v12 }
 0x109   :  { %1180 = vmatprep.mubr.bf16.mxu1 %v419_v11 }
 0x110   :  { %1181 = vmatmul.mubr.bf16.gmra.mxu1 %v420_v17 }
 0x198   :  { %v1154_v19 = vpop.f32.mrf.mxu1 }
 0x199   :  { %v535_v25 = vadd.f32 %v1154_v19, %v1511_v21 }
 0x19a   :  { %v526_v20 = vpop.f32.mrf.mxu1 }
 0x19b   :  { %v527_v23 = vadd.f32 %v1511_v21, %v526_v20  ;;  %v655_v32 = vmax.f32 %v535_v25, 0.0 }
 0x19c   :  { %v1155_v22 = vpop.f32.mrf.mxu1 }
 0x19d   :  { %v538_v24 = vadd.f32 %v1155_v22, %v1511_v21  ;;  %v653_v30 = vmax.f32 %v527_v23, 0.0 }
 0x19e   :  { %v529_v26 = vpop.f32.mrf.mxu1 }
 0x19f   :  { %v530_v27 = vadd.f32 %v1511_v21, %v529_v26  ;;  %v656_v28 = vmax.f32 %v538_v24, 0.0 }
 0x1a0   :  { %v1158_v29 = vpop.f32.mrf.mxu1 }
 0x1a1   :  { %v654_v31 = vmax.f32 %v530_v27, 0.0  ;;  %v686_v37 = vpack.c.bf16 %v656_v28, %v655_v32  ;;  %v551_v41 = vadd.f32 %v1158_v29, %v1511_v21 }
 0x1a2   :  { %v542_v35 = vpop.f32.mrf.mxu1 }
 0x1a3   :  { %v685_v36 = vpack.c.bf16 %v654_v31, %v653_v30  ;;  %v543_v39 = vadd.f32 %v1511_v21, %v542_v35  ;;  %v659_v49 = vmax.f32 %v551_v41, 0.0 }
 0x1a4   :  { %v1159_v38 = vpop.f32.mrf.mxu1 }
 0x1a5   :  { %v554_v40 = vadd.f32 %v1159_v38, %v1511_v21  ;;  %1200 = vmatprep.mubr.bf16.mxu0 %v685_v36  ;;  %v657_v47 = vmax.f32 %v543_v39, 0.0 }
 0x1a6   :  { %v545_v43 = vpop.f32.mrf.mxu1  ;;  %1201 = vmatmul.mubr.bf16.vlgmr.msra.gmra.mxu0 %v686_v37 }
 0x1a7   :  { %v546_v44 = vadd.f32 %v1511_v21, %v545_v43  ;;  %v660_v45 = vmax.f32 %v554_v40, 0.0 }
 0x1a8   :  { %v1162_v46 = vpop.f32.mrf.mxu1 }
 0x1a9   :  { %v658_v48 = vmax.f32 %v546_v44, 0.0  ;;  %v688_v53 = vpack.c.bf16 %v660_v45, %v659_v49  ;;  %v567_v57 = vadd.f32 %v1162_v46, %v1511_v21 }
 0x1aa   :  { %v558_v50 = vpop.f32.mrf.mxu1 }
 0x1ab   :  { %v687_v52 = vpack.c.bf16 %v658_v48, %v657_v47  ;;  %v559_v55 = vadd.f32 %v1511_v21, %v558_v50  ;;  %v663_v63 = vmax.f32 %v567_v57, 0.0 }
 0x1ac   :  { %v1163_v54 = vpop.f32.mrf.mxu1 }
 0x1ad   :  { %v570_v56 = vadd.f32 %v1163_v54, %v1511_v21  ;;  %1204 = vmatprep.mubr.bf16.mxu0 %v687_v52  ;;  %v661_v61 = vmax.f32 %v559_v55, 0.0 }
 0x1ae   :  { %v561_v58 = vpop.f32.mrf.mxu1  ;;  %1205 = vmatmul.mubr.bf16.gmra.mxu0 %v688_v53 }
 0x1af   :  { %v562_v34 = vadd.f32 %v1511_v21, %v561_v58  ;;  %v664_v42 = vmax.f32 %v570_v56, 0.0 }
 0x1b0   :  { %v1166_v59 = vpop.f32.mrf.mxu1 }
 0x1b1   :  { %v662_v62 = vmax.f32 %v562_v34, 0.0  ;;  %v690_v2 = vpack.c.bf16 %v664_v42, %v663_v63  ;;  %v583_v51 = vadd.f32 %v1166_v59, %v1511_v21 }
 0x1b2   :  { %v574_v0 = vpop.f32.mrf.mxu1 }
 0x1b3   :  { %v689_v1 = vpack.c.bf16 %v662_v62, %v661_v61  ;;  %v575_v4 = vadd.f32 %v1511_v21, %v574_v0  ;;  %v667_v12 = vmax.f32 %v583_v51, 0.0 }
 0x1b4   :  { %v1167_v3 = vpop.f32.mrf.mxu1 }
 0x1b5   :  { %v586_v5 = vadd.f32 %v1167_v3, %v1511_v21  ;;  %1208 = vmatprep.mubr.bf16.mxu0 %v689_v1  ;;  %v665_v10 = vmax.f32 %v575_v4, 0.0 }
 0x1b6   :  { %v577_v6 = vpop.f32.mrf.mxu1  ;;  %1209 = vmatmul.mubr.bf16.gmra.mxu0 %v690_v2 }
 0x1b7   :  { %v578_v60 = vadd.f32 %v1511_v21, %v577_v6  ;;  %v668_v8 = vmax.f32 %v586_v5, 0.0 }
 0x1b8   :  { %v1170_v9 = vpop.f32.mrf.mxu1 }
 0x1b9   :  { %v666_v11 = vmax.f32 %v578_v60, 0.0  ;;  %v692_v15 = vpack.c.bf16 %v668_v8, %v667_v12  ;;  %v599_v18 = vadd.f32 %v1170_v9, %v1511_v21  ;;  %v1548_v60 = vld [vmem:[%s1591_s6] ss:$0 sm:$0xff]  ;;  %s1295_s6 = smov [#allocation2]  }
 0x1ba   :  { %v590_v13 = vpop.f32.mrf.mxu1  ;;  %s970_s21 = sshll.u32 %s1295_s6, 4  ;;  %s971_s21 = int_to_ptr.vmem [resolvable:$true] %s970_s21 }
 0x1bb   :  { %v691_v14 = vpack.c.bf16 %v666_v11, %v665_v10  ;;  %v591_v17 = vadd.f32 %v1511_v21, %v590_v13  ;;  %v671_v25 = vmax.f32 %v599_v18, 0.0  ;;  %s1273_s22 = scalar_lea.vmem %s971_s21, 4096  ;;  %p1278_p1 = scmp.lt.s32.totalorder %s971_s21, %s971_s21 }
 0x1bc   :  { %v1171_v16 = vpop.f32.mrf.mxu1  ;;  %p1274_p0 = scmp.ne.s32.totalorder %s971_s21, %s1273_s22  ;;  %p1279_p2 = scmp.lt.s32.totalorder %s1273_s22, %s1273_s22 }
 0x1bd   :  { %v602_v7 = vadd.f32 %v1171_v16, %v1511_v21  ;;  %1212 = vmatprep.mubr.bf16.mxu0 %v691_v14  ;;  %v669_v23 = vmax.f32 %v591_v17, 0.0 }
 0x1be   :  { %v593_v33 = vpop.f32.mrf.mxu1  ;;  %1213 = vmatmul.mubr.bf16.gmra.mxu0 %v692_v15  ;;  %p1280_p3 = por %p1279_p2, %p1278_p1 }
 0x1bf   :  { %v594_v19 = vadd.f32 %v1511_v21, %v593_v33  ;;  %v672_v20 = vmax.f32 %v602_v7, 0.0 }
 0x1c0   :  { %v1174_v22 = vpop.f32.mrf.mxu1  ;;  %p1281_p4 = pnand %p1280_p3, %p1274_p0 }
 0x1c1   :  { %v670_v24 = vmax.f32 %v594_v19, 0.0  ;;  %v694_v28 = vpack.c.bf16 %v672_v20, %v671_v25  ;;  %v615_v32 = vadd.f32 %v1174_v22, %v1511_v21 }
 0x1c2   :  { %v606_v26 = vpop.f32.mrf.mxu1 }
 0x1c3   :  { %v693_v27 = vpack.c.bf16 %v670_v24, %v669_v23  ;;  %v607_v30 = vadd.f32 %v1511_v21, %v606_v26  ;;  %v675_v41 = vmax.f32 %v615_v32, 0.0 }
 0x1c4   :  { %v1175_v29 = vpop.f32.mrf.mxu1 }
 0x1c5   :  { %v618_v31 = vadd.f32 %v1175_v29, %v1511_v21  ;;  %1216 = vmatprep.mubr.bf16.mxu0 %v693_v27  ;;  %v673_v39 = vmax.f32 %v607_v30, 0.0 }
 0x1c6   :  { %v609_v35 = vpop.f32.mrf.mxu1  ;;  %1217 = vmatmul.mubr.bf16.gmra.mxu0 %v694_v28 }
 0x1c7   :  { %v610_v36 = vadd.f32 %v1511_v21, %v609_v35  ;;  %v676_v37 = vmax.f32 %v618_v31, 0.0 }
 0x1c8   :  { %v1178_v38 = vpop.f32.mrf.mxu1 }
 0x1c9   :  { %v674_v40 = vmax.f32 %v610_v36, 0.0  ;;  %v696_v45 = vpack.c.bf16 %v676_v37, %v675_v41  ;;  %v631_v49 = vadd.f32 %v1178_v38, %v1511_v21 }
 0x1ca   :  { %v622_v43 = vpop.f32.mrf.mxu1 }
 0x1cb   :  { %v695_v44 = vpack.c.bf16 %v674_v40, %v673_v39  ;;  %v623_v47 = vadd.f32 %v1511_v21, %v622_v43  ;;  %v679_v57 = vmax.f32 %v631_v49, 0.0 }
 0x1cc   :  { %v1179_v46 = vpop.f32.mrf.mxu1 }
 0x1cd   :  { %v634_v48 = vadd.f32 %v1179_v46, %v1511_v21  ;;  %1220 = vmatprep.mubr.bf16.mxu0 %v695_v44  ;;  %v677_v55 = vmax.f32 %v623_v47, 0.0 }
 0x1ce   :  { %v625_v50 = vpop.f32.mrf.mxu1  ;;  %1221 = vmatmul.mubr.bf16.gmra.mxu0 %v696_v45 }
 0x1cf   :  { %v626_v52 = vadd.f32 %v1511_v21, %v625_v50  ;;  %v680_v53 = vmax.f32 %v634_v48, 0.0 }
 0x1d0   :  { %v1182_v54 = vpop.f32.mrf.mxu1 }
 0x1d1   :  { %v678_v56 = vmax.f32 %v626_v52, 0.0  ;;  %v698_v42 = vpack.c.bf16 %v680_v53, %v679_v57  ;;  %v647_v63 = vadd.f32 %v1182_v54, %v1511_v21 }
 0x1d2   :  { %v638_v58 = vpop.f32.mrf.mxu1 }
 0x1d3   :  { %v697_v34 = vpack.c.bf16 %v678_v56, %v677_v55  ;;  %v639_v61 = vadd.f32 %v1511_v21, %v638_v58  ;;  %v683_v5 = vmax.f32 %v647_v63, 0.0 }
 0x1d4   :  { %v1183_v59 = vpop.f32.mrf.mxu1 }
 0x1d5   :  { %v650_v62 = vadd.f32 %v1183_v59, %v1511_v21  ;;  %1224 = vmatprep.mubr.bf16.mxu0 %v697_v34  ;;  %v681_v3 = vmax.f32 %v639_v61, 0.0 }
 0x1d6   :  { %v641_v0 = vpop.f32.mrf.mxu1  ;;  %1225 = vmatmul.mubr.bf16.gmra.mxu0 %v698_v42 }
 0x1d7   :  { %v642_v1 = vadd.f32 %v1511_v21, %v641_v0  ;;  %v684_v2 = vmax.f32 %v650_v62, 0.0 }
 0x1d9   :  { %v682_v4 = vmax.f32 %v642_v1, 0.0  ;;  %v700_v6 = vpack.c.bf16 %v684_v2, %v683_v5 }
 0x1db   :  { %v699_v51 = vpack.c.bf16 %v682_v4, %v681_v3 }
 0x1dd   :  { %1228 = vmatprep.mubr.bf16.mxu0 %v699_v51 }
 0x1de   :  { %1229 = vmatmul.mubr.bf16.gmra.mxu0 %v700_v6 }
 0x266   :  { %v1202_v8 = vpop.f32.mrf.mxu0 }
 0x267   :  { %v815_v9 = vadd.f32 %v1202_v8, %v1548_v60 }
 0x268   :  { %v806_v10 = vpop.f32.mrf.mxu0 }
 0x269   :  { %935 = vst [vmem:[#allocation2 + $0x10] sm:$0xff] %v815_v9  ;;  %v807_v21 = vadd.f32 %v1548_v60, %v806_v10 }
 0x26a   :  { %v1203_v11 = vpop.f32.mrf.mxu0 }
 0x26b   :  { %933 = vst [vmem:[#allocation2] sm:$0xff] %v807_v21  ;;  %v818_v12 = vadd.f32 %v1203_v11, %v1548_v60 }
 0x26c   :  { %v809_v13 = vpop.f32.mrf.mxu0 }
 0x26d   :  { %936 = vst [vmem:[#allocation2 + $0x18] sm:$0xff] %v818_v12  ;;  %v810_v14 = vadd.f32 %v1548_v60, %v809_v13 }
 0x26e   :  { %v1206_v15 = vpop.f32.mrf.mxu0 }
 0x26f   :  { %934 = vst [vmem:[#allocation2 + $0x8] sm:$0xff] %v810_v14  ;;  %v831_v16 = vadd.f32 %v1206_v15, %v1548_v60 }
 0x270   :  { %v822_v17 = vpop.f32.mrf.mxu0 }
 0x271   :  { %939 = vst [vmem:[#allocation2 + $0x30] sm:$0xff] %v831_v16  ;;  %v823_v7 = vadd.f32 %v1548_v60, %v822_v17 }
 0x272   :  { %v1207_v18 = vpop.f32.mrf.mxu0 }
 0x273   :  { %937 = vst [vmem:[#allocation2 + $0x20] sm:$0xff] %v823_v7  ;;  %v834_v33 = vadd.f32 %v1207_v18, %v1548_v60 }
 0x274   :  { %v825_v19 = vpop.f32.mrf.mxu0 }
 0x275   :  { %940 = vst [vmem:[#allocation2 + $0x38] sm:$0xff] %v834_v33  ;;  %v826_v20 = vadd.f32 %v1548_v60, %v825_v19 }
 0x276   :  { %v1210_v22 = vpop.f32.mrf.mxu0 }
 0x277   :  { %938 = vst [vmem:[#allocation2 + $0x28] sm:$0xff] %v826_v20  ;;  %v847_v23 = vadd.f32 %v1210_v22, %v1548_v60 }
 0x278   :  { %v838_v24 = vpop.f32.mrf.mxu0 }
 0x279   :  { %943 = vst [vmem:[#allocation2 + $0x50] sm:$0xff] %v847_v23  ;;  %v839_v25 = vadd.f32 %v1548_v60, %v838_v24 }
 0x27a   :  { %v1211_v26 = vpop.f32.mrf.mxu0 }
 0x27b   :  { %941 = vst [vmem:[#allocation2 + $0x40] sm:$0xff] %v839_v25  ;;  %v850_v27 = vadd.f32 %v1211_v26, %v1548_v60 }
 0x27c   :  { %v841_v28 = vpop.f32.mrf.mxu0 }
 0x27d   :  { %944 = vst [vmem:[#allocation2 + $0x58] sm:$0xff] %v850_v27  ;;  %v842_v29 = vadd.f32 %v1548_v60, %v841_v28 }
 0x27e   :  { %v1214_v30 = vpop.f32.mrf.mxu0 }
 0x27f   :  { %942 = vst [vmem:[#allocation2 + $0x48] sm:$0xff] %v842_v29  ;;  %v863_v31 = vadd.f32 %v1214_v30, %v1548_v60 }
 0x280   :  { %v854_v32 = vpop.f32.mrf.mxu0 }
 0x281   :  { %947 = vst [vmem:[#allocation2 + $0x70] sm:$0xff] %v863_v31  ;;  %v855_v35 = vadd.f32 %v1548_v60, %v854_v32 }
 0x282   :  { %v1215_v36 = vpop.f32.mrf.mxu0 }
 0x283   :  { %945 = vst [vmem:[#allocation2 + $0x60] sm:$0xff] %v855_v35  ;;  %v866_v37 = vadd.f32 %v1215_v36, %v1548_v60 }
 0x284   :  { %v857_v38 = vpop.f32.mrf.mxu0 }
 0x285   :  { %948 = vst [vmem:[#allocation2 + $0x78] sm:$0xff] %v866_v37  ;;  %v858_v39 = vadd.f32 %v1548_v60, %v857_v38 }
 0x286   :  { %v1218_v40 = vpop.f32.mrf.mxu0 }
 0x287   :  { %946 = vst [vmem:[#allocation2 + $0x68] sm:$0xff] %v858_v39  ;;  %v879_v41 = vadd.f32 %v1218_v40, %v1548_v60 }
 0x288   :  { %v870_v43 = vpop.f32.mrf.mxu0 }
 0x289   :  { %951 = vst [vmem:[#allocation2 + $0x90] sm:$0xff] %v879_v41  ;;  %v871_v44 = vadd.f32 %v1548_v60, %v870_v43 }
 0x28a   :  { %v1219_v45 = vpop.f32.mrf.mxu0 }
 0x28b   :  { %949 = vst [vmem:[#allocation2 + $0x80] sm:$0xff] %v871_v44  ;;  %v882_v46 = vadd.f32 %v1219_v45, %v1548_v60 }
 0x28c   :  { %v873_v47 = vpop.f32.mrf.mxu0 }
 0x28d   :  { %952 = vst [vmem:[#allocation2 + $0x98] sm:$0xff] %v882_v46  ;;  %v874_v48 = vadd.f32 %v1548_v60, %v873_v47 }
 0x28e   :  { %v1222_v49 = vpop.f32.mrf.mxu0 }
 0x28f   :  { %950 = vst [vmem:[#allocation2 + $0x88] sm:$0xff] %v874_v48  ;;  %v895_v50 = vadd.f32 %v1222_v49, %v1548_v60 }
 0x290   :  { %v886_v52 = vpop.f32.mrf.mxu0 }
 0x291   :  { %955 = vst [vmem:[#allocation2 + $0xb0] sm:$0xff] %v895_v50  ;;  %v887_v53 = vadd.f32 %v1548_v60, %v886_v52 }
 0x292   :  { %v1223_v54 = vpop.f32.mrf.mxu0 }
 0x293   :  { %953 = vst [vmem:[#allocation2 + $0xa0] sm:$0xff] %v887_v53  ;;  %v898_v55 = vadd.f32 %v1223_v54, %v1548_v60 }
 0x294   :  { %v889_v56 = vpop.f32.mrf.mxu0 }
 0x295   :  { %956 = vst [vmem:[#allocation2 + $0xb8] sm:$0xff] %v898_v55  ;;  %v890_v57 = vadd.f32 %v1548_v60, %v889_v56 }
 0x296   :  { %v1226_v58 = vpop.f32.mrf.mxu0 }
 0x297   :  { %954 = vst [vmem:[#allocation2 + $0xa8] sm:$0xff] %v890_v57  ;;  %v911_v34 = vadd.f32 %v1226_v58, %v1548_v60 }
 0x298   :  { %v902_v42 = vpop.f32.mrf.mxu0 }
 0x299   :  { %959 = vst [vmem:[#allocation2 + $0xd0] sm:$0xff] %v911_v34  ;;  %v903_v59 = vadd.f32 %v1548_v60, %v902_v42 }
 0x29a   :  { %v1227_v61 = vpop.f32.mrf.mxu0 }
 0x29b   :  { %957 = vst [vmem:[#allocation2 + $0xc0] sm:$0xff] %v903_v59  ;;  %v914_v62 = vadd.f32 %v1227_v61, %v1548_v60 }
 0x29c   :  { %v905_v63 = vpop.f32.mrf.mxu0 }
 0x29d   :  { %960 = vst [vmem:[#allocation2 + $0xd8] sm:$0xff] %v914_v62  ;;  %v906_v0 = vadd.f32 %v1548_v60, %v905_v63 }
 0x29e   :  { %v1230_v1 = vpop.f32.mrf.mxu0 }
 0x29f   :  { %958 = vst [vmem:[#allocation2 + $0xc8] sm:$0xff] %v906_v0  ;;  %v927_v2 = vadd.f32 %v1230_v1, %v1548_v60 }
 0x2a0   :  { %v918_v3 = vpop.f32.mrf.mxu0 }
 0x2a1   :  { %963 = vst [vmem:[#allocation2 + $0xf0] sm:$0xff] %v927_v2  ;;  %v919_v4 = vadd.f32 %v1548_v60, %v918_v3 }
 0x2a2   :  { %v1231_v5 = vpop.f32.mrf.mxu0 }
 0x2a3   :  { %961 = vst [vmem:[#allocation2 + $0xe0] sm:$0xff] %v919_v4  ;;  %v930_v51 = vadd.f32 %v1231_v5, %v1548_v60 }
 0x2a4   :  { %v921_v6 = vpop.f32.mrf.mxu0 }
 0x2a5   :  { %964 = vst [vmem:[#allocation2 + $0xf8] sm:$0xff] %v930_v51  ;;  %v922_v8 = vadd.f32 %v1548_v60, %v921_v6 }
 0x2a7   :  { %962 = vst [vmem:[#allocation2 + $0xe8] sm:$0xff] %v922_v8 }
 0x2a8   :  { %1284 = shalt.err (!%p1281_p4)
}
 0x2a9   :  { %s1296_s23 = smov 128   ;;  %s1297_s24 = smov 8  }
 0x2aa   :  { %976 = dma.vmem_to_hbm [thread:$0]  %s971_s21, 4096, %s1592_s7, [#allocation3], %s1296_s23, %s1296_s23, %s1297_s24  }
 0x2ab   :  { %1293 = dma.done.wait [#allocation3], 4096  }
 0x2ac   :  { %1294 = vsyncadd [#allocation3], 4294963200 }
 0x2ad   :  { %980 = vsyncpa [#allocation3], 1 }

</bundles_post_ra>
